<compile_context>
chip_gen: v7x
topology: tpu7x:2x2x1
jax: 0.10.0
libtpu: 0.0.40
codegen_flags: <defaults>
</compile_context>

<pallas_src>
import math

import jax
import jax.numpy as jnp
from jax.experimental import pallas as pl
from jax.experimental.pallas import tpu as pltpu

COMPRESSION_RATIO = 0.3
THRESHOLD = 0.7

_LANE_CAP = 1024                  # max lanes of the flattened lane-dense view (multiple of 128)
_BLOCK_BYTES = 4 * 1024 * 1024    # ~4 MiB per block -> 16 MiB total with double buffering
_VMEM_LIMIT = 32 * 1024 * 1024    # explicit scoped-VMEM limit (covers v5e's 16 MiB default)


def _drc_kernel(x_ref, o_ref):
    x = x_ref[...]
    thr = jnp.asarray(THRESHOLD, dtype=x.dtype)
    ratio = jnp.asarray(COMPRESSION_RATIO, dtype=x.dtype)
    # Exact match of the PyTorch reference (safe for non-finite inputs).
    o_ref[...] = jnp.where(x > thr, thr + (x - thr) * ratio, x)


def _to_2d(x: jax.Array) -> jax.Array:
    """Free (row-major) reshape of any shape to a lane-friendly 2D view."""
    shape = x.shape
    n = math.prod(shape) if shape else 1
    if n % 128 == 0:
        # Largest multiple-of-128 divisor of n, capped at _LANE_CAP.
        lanes = 128
        for m in range(_LANE_CAP // 128, 0, -1):
            if n % (128 * m) == 0:
                lanes = 128 * m
                break
        return x.reshape(n // lanes, lanes)
    # Fallback: collapse trailing dims until the last axis is >= 128 lanes
    # (or everything is collapsed). Only boundary lane tiles get masked stores.
    cols = 1
    i = len(shape)
    while i > 0 and cols < 128:
        i -= 1
        cols *= shape[i]
    return x.reshape(n // cols, cols)


def _pick_blocks(rows: int, cols: int, itemsize: int) -> tuple[int, int]:
    # Lane axis: prefer full-width blocks -> one contiguous linear DMA per step.
    if 8 * cols * itemsize <= _BLOCK_BYTES:
        bc = cols
    else:
        bc = max(128, (_BLOCK_BYTES // (8 * itemsize)) // 128 * 128)
    # Row axis: biggest multiple-of-8 strip that keeps the block within budget.
    max_br = max(8, (_BLOCK_BYTES // (bc * itemsize)) // 8 * 8)
    br = rows if rows <= max_br else max_br
    # Megacore (v7x: 2 TensorCores): guarantee >= 2 steps on the parallel row
    # axis whenever the row count allows a legal (multiple-of-8) split.
    if br == rows and rows >= 16:
        half = -(-((rows + 1) // 2) // 8) * 8   # ceil(rows/2) rounded up to mult of 8
        if half < rows:
            br = half
    return br, bc


def _drc_2d(x2d: jax.Array, donate: bool = False) -> jax.Array:
    rows, cols = x2d.shape
    itemsize = jnp.dtype(x2d.dtype).itemsize
    br, bc = _pick_blocks(rows, cols, itemsize)
    grid = (pl.cdiv(rows, br), pl.cdiv(cols, bc))
    n = rows * cols
    cost = pl.CostEstimate(flops=5 * n, transcendentals=0, bytes_accessed=2 * n * itemsize)
    return pl.pallas_call(
        _drc_kernel,
        out_shape=jax.ShapeDtypeStruct((rows, cols), x2d.dtype),
        grid_spec=pltpu.PrefetchScalarGridSpec(
            num_scalar_prefetch=0,
            grid=grid,
            in_specs=[pl.BlockSpec((br, bc), lambda i, j: (i, j))],
            out_specs=pl.BlockSpec((br, bc), lambda i, j: (i, j)),
        ),
        compiler_params=pltpu.CompilerParams(
            dimension_semantics=("parallel", "parallel"),
            vmem_limit_bytes=_VMEM_LIMIT,
        ),
        cost_estimate=cost,
        input_output_aliases=({0: 0} if donate else {}),
    )(x2d)


def dynamic_range_controller(mel_spec: jax.Array, *, donate: bool = False) -> jax.Array:
    """Soft compression above the threshold. Works for any shape (e.g. (B, n_mels, T)).

    Set donate=True when the caller donates mel_spec (halves peak HBM footprint).
    """
    shape = mel_spec.shape
    n = math.prod(shape) if shape else 1
    if n == 0:
        return mel_spec
    out2d = _drc_2d(_to_2d(mel_spec), donate=donate)
    return out2d.reshape(shape)


def _reference(mel_spec: jax.Array) -> jax.Array:
    return jnp.where(
        mel_spec > THRESHOLD,
        THRESHOLD + (mel_spec - THRESHOLD) * COMPRESSION_RATIO,
        mel_spec,
    )


if __name__ == "__main__":
    key = jax.random.PRNGKey(0)
    k1, k2, k3 = jax.random.split(key, 3)

    # Case 1: n % 128 != 0 -> fallback collapses trailing dims to (2, 2400) (cols >= 128).
    x1 = jax.random.uniform(k1, (2, 80, 30), dtype=jnp.float32, minval=0.0, maxval=1.5)
    # Case 2: n % 128 == 0 -> lane-dense flatten to (1, 1024).
    x2 = jax.random.uniform(k2, (2, 16, 32), dtype=jnp.float32, minval=0.0, maxval=1.5)
    # Case 3: lane-dense flatten to (32, 1024); exercises the >=2 row-tile (megacore) split.
    x3 = jax.random.uniform(k3, (4, 128, 64), dtype=jnp.float32, minval=0.0, maxval=1.5)

    for x in (x1, x2, x3):
        out = jax.block_until_ready(dynamic_range_controller(x))
        ref = _reference(x)
        assert out.shape == x.shape and out.dtype == x.dtype
        assert jnp.allclose(out, ref, atol=1e-6, rtol=1e-6), "mismatch vs reference"

    print("KERNEL_OK")
</pallas_src>

<mosaic_0001>
module attributes {stable_mosaic.version = 11 : i64} {
  func.func @_drc_kernel(%arg0: i32, %arg1: i32, %arg2: memref<2x2400xf32, #tpu.memory_space<vmem>>, %arg3: memref<2x2400xf32, #tpu.memory_space<vmem>>) attributes {dimension_semantics = [#tpu.dimension_semantics<parallel>, #tpu.dimension_semantics<parallel>], iteration_bounds = array<i64: 1, 1>, scalar_prefetch = 0 : i64, scratch_operands = 0 : i64, tpu.core_type = #tpu.core_type<tc>, window_params = [{transform_indices = @transform_0, window_bounds = array<i64: 2, 2400>}, {transform_indices = @transform_1, window_bounds = array<i64: 2, 2400>}]} {
    %c0 = arith.constant 0 : index
    %c0_0 = arith.constant 0 : index
    %0 = vector.load %arg2[%c0, %c0_0] : memref<2x2400xf32, #tpu.memory_space<vmem>>, vector<2x2400xf32>
    %cst = arith.constant 0.699999988 : f32
    %1 = vector.broadcast %cst : f32 to vector<2x2400xf32>
    %2 = arith.cmpf ogt, %0, %1 : vector<2x2400xf32>
    %cst_1 = arith.constant 0.699999988 : f32
    %3 = vector.broadcast %cst_1 : f32 to vector<2x2400xf32>
    %4 = arith.subf %0, %3 : vector<2x2400xf32>
    %cst_2 = arith.constant 3.000000e-01 : f32
    %5 = vector.broadcast %cst_2 : f32 to vector<2x2400xf32>
    %6 = arith.mulf %4, %5 : vector<2x2400xf32>
    %cst_3 = arith.constant 0.699999988 : f32
    %7 = vector.broadcast %cst_3 : f32 to vector<2x2400xf32>
    %8 = arith.addf %7, %6 : vector<2x2400xf32>
    %9 = arith.select %2, %8, %0 : vector<2x2400xi1>, vector<2x2400xf32>
    %c0_4 = arith.constant 0 : index
    %c0_5 = arith.constant 0 : index
    %10 = vector.load %arg3[%c0_4, %c0_5] : memref<2x2400xf32, #tpu.memory_space<vmem>>, vector<2x2400xf32>
    tpu.vector_store %arg3[%c0_4, %c0_5], %9 {strides = array<i32>} : memref<2x2400xf32, #tpu.memory_space<vmem>>, vector<2x2400xf32>,
    return
  }
  func.func @transform_0(%arg0: i32, %arg1: i32) -> (i32, i32) {
    %c0_i32 = arith.constant 0 : i32
    return %arg0, %arg1 : i32, i32
  }
  func.func @transform_1(%arg0: i32, %arg1: i32) -> (i32, i32) {
    %c0_i32 = arith.constant 0 : i32
    return %arg0, %arg1 : i32, i32
  }
}

</mosaic_0001>

<bundles_post_ra>
// kernel: tpu_custom_call.1
= control target key start
LH: loop header
LB: loop body
LE: loop exit
PB: predicated region body
PF: predicated region fallthrough
CT: control target
= control target key end

     0   :  { %6 = vsyncpa [#allocation3], 0  ;;  %s169_s0 = inlined_call_operand.hbm [shape: f32[2,2400], index: 0, kind: input, shape index: {}]   ;;  %s170_s1 = inlined_call_operand.hbm [shape: f32[2,2400], index: 1, kind: output, shape index: {}]  }
   0x1   :  { %7 = vsyncpa [#allocation4], 0  ;;  %s131_s6 = smov [#allocation2]   ;;  %s83_s10 = scalar_lea.hbm %s169_s0, 608 }
   0x2   :  { %s14_s7 = sshll.u32 %s131_s6, 4  ;;  %p84_p0 = scmp.ne.s32.totalorder %s169_s0, %s83_s10  ;;  %s15_s7 = int_to_ptr.vmem [resolvable:$true] %s14_s7 }
   0x3   :  { %p87_p1 = scmp.lt.u32.totalorder %s83_s10, %s169_s0 }
   0x5   :  { %p89_p2 = pnand %p87_p1, %p84_p0 }
   0x7   :  { %92 = shalt.err (!%p89_p2)
}
   0x8   :  { %s93_s15 = scalar_lea.vmem %s15_s7, 608  ;;  %p98_p4 = scmp.lt.s32.totalorder %s15_s7, %s15_s7 }
   0x9   :  { %p94_p3 = scmp.ne.s32.totalorder %s15_s7, %s93_s15  ;;  %p99_p5 = scmp.lt.s32.totalorder %s93_s15, %s93_s15 }
   0xb   :  { %p100_p6 = por %p99_p5, %p98_p4 }
   0xd   :  { %p101_p7 = pnand %p100_p6, %p94_p3 }
   0xf   :  { %104 = shalt.err (!%p101_p7)
}
  0x10   :  { %17 = dma.hbm_to_vmem [thread:$0]  %s169_s0, 608, %s15_s7, [#allocation3]  }
  0x11   :  { %127 = dma.done.wait [#allocation3], 608  }
  0x12   :  { %128 = vsyncadd [#allocation3], 4294966688  ;;  %v21_v0 = vld [vmem:[#allocation2] sm:$0xff]  ;;  %v22_v1 = vld [vmem:[#allocation2 + $0x8] sm:$0xff]  ;;  %vm55_vm0 = vcmask 1041408   ;;  %vm56_vm1 = vcmask 1043458  }
  0x13   :  { %v23_v2 = vld [vmem:[#allocation2 + $0x10] sm:$0xff]  ;;  %v76_v3 = vadd.f32 -0.7, %v21_v0  ;;  %vm26_vm2 = vcmp.gt.f32.partialorder %v21_v0, 0.7  ;;  %v24_v7 = vld [vmem:[#allocation2 + $0x18] sm:$0xff]  ;;  %vm57_vm5 = vmor %vm56_vm1, %vm55_vm0 }
  0x14   :  { %v77_v4 = vadd.f32 -0.7, %v22_v1  ;;  %v78_v5 = vadd.f32 -0.7, %v23_v2  ;;  %v25_v8 = vld [vmem:[#allocation2 + $0x20] sm:$0x3f] }
  0x15   :  { %v36_v6 = vmul.f32 0.3, %v76_v3  ;;  %vm27_vm3 = vcmp.gt.f32.partialorder %v22_v1, 0.7  ;;  %vm28_vm4 = vcmp.gt.f32.partialorder %v23_v2, 0.7 }
  0x16   :  { %v37_v9 = vmul.f32 0.3, %v77_v4  ;;  %v38_v10 = vmul.f32 0.3, %v78_v5  ;;  %v79_v12 = vadd.f32 -0.7, %v24_v7 }
  0x17   :  { %v41_v11 = vadd.f32 0.7, %v36_v6  ;;  %v80_v15 = vadd.f32 -0.7, %v25_v8  ;;  %vm58_vm6 = vcmask 783364   ;;  %s132_s0 = smov [#allocation5]  }
  0x18   :  { %v42_v13 = vadd.f32 0.7, %v37_v9  ;;  %v43_v14 = vadd.f32 0.7, %v38_v10  ;;  %v39_v17 = vmul.f32 0.3, %v79_v12  ;;  %vm59_vm9 = vmor %vm58_vm6, %vm57_vm5 }
  0x19   :  { %v46_v16 = vsel %vm26_vm2, %v41_v11, %v21_v0  ;;  %vm29_vm7 = vcmp.gt.f32.partialorder %v24_v7, 0.7  ;;  %v40_v20 = vmul.f32 0.3, %v80_v15  ;;  %s67_s18 = sshll.u32 %s132_s0, 4  ;;  %s68_s18 = int_to_ptr.vmem [resolvable:$true] %s67_s18 }
  0x1a   :  { %51 = vst [vmem:[#allocation5] sm:$0xff] %v46_v16  ;;  %v47_v18 = vsel %vm27_vm3, %v42_v13, %v22_v1  ;;  %v48_v19 = vsel %vm28_vm4, %v43_v14, %v23_v2  ;;  %v44_v21 = vadd.f32 0.7, %v39_v17  ;;  %vm30_vm8 = vcmp.gt.f32.partialorder %v25_v8, 0.7  ;;  %s105_s19 = scalar_lea.vmem %s68_s18, 608  ;;  %p110_p9 = scmp.lt.s32.totalorder %s68_s18, %s68_s18 }
  0x1b   :  { %52 = vst [vmem:[#allocation5 + $0x8] sm:$0xff] %v47_v18  ;;  %53 = vst [vmem:[#allocation5 + $0x10] sm:$0xff] %v48_v19  ;;  %v45_v22 = vadd.f32 0.7, %v40_v20  ;;  %p106_p8 = scmp.ne.s32.totalorder %s68_s18, %s105_s19  ;;  %p111_p10 = scmp.lt.s32.totalorder %s105_s19, %s105_s19 }
  0x1c   :  { %v49_v23 = vsel %vm29_vm7, %v44_v21, %v24_v7 }
  0x1d   :  { %54 = vst [vmem:[#allocation5 + $0x18] sm:$0xff] %v49_v23  ;;  %v50_v24 = vsel %vm30_vm8, %v45_v22, %v25_v8  ;;  %p112_p11 = por %p111_p10, %p110_p9 }
  0x1e   :  { %60 = vst.msk [vmem:[#allocation5 + $0x20] sm:$0x3f] %vm59_vm9, %v50_v24 }
  0x1f   :  { %p113_p12 = pnand %p112_p11, %p106_p8 }
  0x21   :  { %116 = shalt.err (!%p113_p12)
}
  0x22   :  { %s117_s22 = scalar_lea.hbm %s170_s1, 608 }
  0x23   :  { %p118_p13 = scmp.ne.s32.totalorder %s170_s1, %s117_s22  ;;  %p121_p0 = scmp.lt.u32.totalorder %s117_s22, %s170_s1 }
  0x25   :  { %p123_p1 = pnand %p121_p0, %p118_p13 }
  0x27   :  { %126 = shalt.err (!%p123_p1)
}
  0x28   :  { %70 = dma.vmem_to_hbm [thread:$0]  %s68_s18, 608, %s170_s1, [#allocation4]  }
  0x29   :  { %129 = dma.done.wait [#allocation4], 608  }
  0x2a   :  { %130 = vsyncadd [#allocation4], 4294966688 }
  0x2b   :  { %74 = vsyncpa [#allocation3], 1 }
  0x2c   :  { %75 = vsyncpa [#allocation4], 1 }

</bundles_post_ra>
